<compile_context>
chip_gen: v6e
topology: v6e:2x2x1
jax: 0.10.0
libtpu: 0.0.40
codegen_flags: <defaults>
</compile_context>

<pallas_src>
import jax
import jax.numpy as jnp
from jax import lax
from jax.experimental import pallas as pl
from jax.experimental.pallas import tpu as pltpu


def _round_up(x, m):
    return ((x + m - 1) // m) * m


def _tied_logits_kernel(hidden_ref, w_ref, out_ref):
    # hidden_ref : (tile_n, H)      bf16  -- gathered embedding rows for this N tile
    # w_ref      : (tile_v, H)      bf16  -- vocab tile of the shared weight
    # out_ref    : (tile_n, tile_v) f32   -- logits tile = hidden @ W_tile.T
    out_ref[...] = lax.dot_general(
        hidden_ref[...],
        w_ref[...],
        dimension_numbers=(((1,), (1,)), ((), ())),  # contract on H; no weight transpose
        preferred_element_type=jnp.float32,          # f32 accumulation on the MXU
    )


def shared_embedding_forward(token_ids, weight, *, tile_n=None, tile_v=None):
    """token_ids: (B, S) int32; weight: (V, H) float32 -> (B, S, V) float32."""
    B, S = token_ids.shape
    V, H = weight.shape
    N = B * S

    # Embedding gather (F.embedding) in the wrapper via XLA gather; the Pallas
    # kernel handles the heavy tied-weight projection.
    # TODO(synk): jnp.take clamps out-of-range ids, PyTorch F.embedding raises.
    tok_flat = token_ids.reshape(N).astype(jnp.int32)
    hidden = jnp.take(weight, tok_flat, axis=0)          # (N, H) f32

    # bf16 operands into the MXU; accumulation stays f32 inside the kernel.
    hidden_bf = hidden.astype(jnp.bfloat16)
    weight_bf = weight.astype(jnp.bfloat16)
    in_bytes, out_bytes = 2, 4

    # Per-generation VMEM capacity (v5e/v6e: 128 MiB, v7x: 64 MiB per core).
    try:
        vmem_cap = int(pltpu.get_tpu_info().vmem_capacity_bytes)
    except Exception:
        vmem_cap = 64 << 20                               # safe on every generation
    vmem_budget = max(16 << 20, int(vmem_cap * 0.8))

    # ---- tile sizing ------------------------------------------------------
    # N tile: keep the whole hidden resident when it is small (<= 8 MiB bf16)
    # so it is DMA'd once for the entire grid; otherwise 512 rows.
    if tile_n is None:
        if N * H * in_bytes <= (8 << 20):
            tile_n = _round_up(N, 8)
        else:
            tile_n = 512
    tile_n = max(8, _round_up(tile_n, 8))
    N_pad = _round_up(N, tile_n)

    # V tile: as large as the VMEM budget allows, multiple of 128.
    if tile_v is None:
        tile_v = min(2048, _round_up(V, 128))
    tile_v = max(128, (tile_v // 128) * 128)

    def _vmem_need(tn, tv):
        return (2 * tn * H * in_bytes        # hidden tile, double-buffered
                + 2 * tv * H * in_bytes      # weight tile, double-buffered
                + 2 * tn * tv * out_bytes    # output tile, double-buffered
                + (4 << 20))                 # compiler scratch headroom

    while tile_v > 128 and _vmem_need(tile_n, tile_v) > vmem_budget:
        tile_v //= 2
    while tile_n > 8 and _vmem_need(tile_n, tile_v) > vmem_budget:
        tile_n = max(8, tile_n // 2)
    N_pad = _round_up(N, tile_n)
    V_pad = _round_up(V, tile_v)

    # Zero-pad ragged edges; padded rows / vocab columns are sliced off below.
    if N_pad != N:
        hidden_bf = jnp.pad(hidden_bf, ((0, N_pad - N), (0, 0)))
    if V_pad != V:
        weight_bf = jnp.pad(weight_bf, ((0, V_pad - V), (0, 0)))

    vmem_limit = int(min(_vmem_need(tile_n, tile_v), vmem_cap))

    # V outer, N inner: weight block index (j, 0) is invariant over the inner
    # axis, so each weight tile is fetched from HBM exactly once.
    grid = (V_pad // tile_v, N_pad // tile_n)

    out_flat = pl.pallas_call(
        _tied_logits_kernel,
        out_shape=jax.ShapeDtypeStruct((N_pad, V_pad), jnp.float32),
        grid_spec=pltpu.PrefetchScalarGridSpec(
            num_scalar_prefetch=0,
            grid=grid,
            in_specs=[
                pl.BlockSpec((tile_n, H), lambda j, i: (i, 0)),   # hidden tile
                pl.BlockSpec((tile_v, H), lambda j, i: (j, 0)),   # weight (vocab) tile
            ],
            out_specs=pl.BlockSpec((tile_n, tile_v), lambda j, i: (i, j)),
        ),
        compiler_params=pltpu.CompilerParams(
            dimension_semantics=("parallel", "parallel"),
            vmem_limit_bytes=vmem_limit,
        ),
    )(hidden_bf, weight_bf)

    return out_flat[:N, :V].reshape(B, S, V)


if __name__ == "__main__":
    # Small deterministic shapes consistent with SharedEmbedding(vocab, hidden).
    vocab_size = 128
    hidden_dim = 32
    batch, seq = 2, 8

    key = jax.random.PRNGKey(0)
    k_w, k_t = jax.random.split(key)

    # torch.rand -> uniform [0, 1)
    weight = jax.random.uniform(k_w, (vocab_size, hidden_dim), dtype=jnp.float32)
    token_ids = jax.random.randint(k_t, (batch, seq), 0, vocab_size, dtype=jnp.int32)

    out = shared_embedding_forward(token_ids, weight)
    out = jax.block_until_ready(out)
    assert out.shape == (batch, seq, vocab_size)

    # Reference with matching precision policy: bf16 operands, f32 accumulation.
    hidden_ref = jnp.take(weight, token_ids, axis=0).astype(jnp.bfloat16)
    ref = jnp.dot(
        hidden_ref.reshape(-1, hidden_dim),
        weight.astype(jnp.bfloat16).T,
        preferred_element_type=jnp.float32,
    ).reshape(batch, seq, vocab_size)
    assert jnp.allclose(out, ref, atol=1e-3, rtol=1e-3), "mismatch vs reference"

    # Sanity check against the pure-f32 PyTorch semantics (loose tolerance:
    # bf16 operands differ slightly from an all-f32 reference).
    ref_f32 = jnp.take(weight, token_ids, axis=0) @ weight.T
    assert jnp.allclose(out, ref_f32, atol=1e-1, rtol=1e-1), "mismatch vs f32 reference"

    print("KERNEL_OK")
</pallas_src>

<mosaic_0001>
module attributes {stable_mosaic.version = 11 : i64} {
  func.func @_tied_logits_kernel(%arg0: i32, %arg1: i32, %arg2: memref<16x32xbf16, #tpu.memory_space<vmem>>, %arg3: memref<128x32xbf16, #tpu.memory_space<vmem>>, %arg4: memref<16x128xf32, #tpu.memory_space<vmem>>) attributes {dimension_semantics = [#tpu.dimension_semantics<parallel>, #tpu.dimension_semantics<parallel>], iteration_bounds = array<i64: 1, 1>, scalar_prefetch = 0 : i64, scratch_operands = 0 : i64, tpu.core_type = #tpu.core_type<tc>, window_params = [{transform_indices = @transform_0, window_bounds = array<i64: 16, 32>}, {transform_indices = @transform_1, window_bounds = array<i64: 128, 32>}, {transform_indices = @transform_2, window_bounds = array<i64: 16, 128>}]} {
    %c0 = arith.constant 0 : index
    %c0_0 = arith.constant 0 : index
    %0 = vector.load %arg2[%c0, %c0_0] : memref<16x32xbf16, #tpu.memory_space<vmem>>, vector<16x32xbf16>
    %c0_1 = arith.constant 0 : index
    %c0_2 = arith.constant 0 : index
    %1 = vector.load %arg3[%c0_1, %c0_2] : memref<128x32xbf16, #tpu.memory_space<vmem>>, vector<128x32xbf16>
    %cst = arith.constant dense<0.000000e+00> : vector<16x128xf32>
    %2 = tpu.matmul %0, %1, %cst {dimension_numbers = #tpu.dot_dimension_numbers<[1], [1], [0], [0], [0, 0, 1, 0], [], []>} : vector<16x32xbf16>, vector<128x32xbf16>, vector<16x128xf32> -> vector<16x128xf32>
    %c0_3 = arith.constant 0 : index
    %c0_4 = arith.constant 0 : index
    %3 = vector.load %arg4[%c0_3, %c0_4] : memref<16x128xf32, #tpu.memory_space<vmem>>, vector<16x128xf32>
    tpu.vector_store %arg4[%c0_3, %c0_4], %2 {strides = array<i32>} : memref<16x128xf32, #tpu.memory_space<vmem>>, vector<16x128xf32>,
    return
  }
  func.func @transform_0(%arg0: i32, %arg1: i32) -> (i32, i32) {
    %c0_i32 = arith.constant 0 : i32
    %c0_i32_0 = arith.constant 0 : i32
    return %arg1, %c0_i32 : i32, i32
  }
  func.func @transform_1(%arg0: i32, %arg1: i32) -> (i32, i32) {
    %c0_i32 = arith.constant 0 : i32
    %c0_i32_0 = arith.constant 0 : i32
    return %arg0, %c0_i32 : i32, i32
  }
  func.func @transform_2(%arg0: i32, %arg1: i32) -> (i32, i32) {
    %c0_i32 = arith.constant 0 : i32
    return %arg1, %arg0 : i32, i32
  }
}

</mosaic_0001>

<bundles_post_ra>
// kernel: tpu_custom_call.1
= control target key start
LH: loop header
LB: loop body
LE: loop exit
PB: predicated region body
PF: predicated region fallthrough
CT: control target
= control target key end

     0   :  { %v238_v1 = vmov 0.0   ;;  %vm76_vm0 = vcmask 261120   ;;  %vm239_vm1 = vmmov 0   ;;  %s297_s0 = inlined_call_operand.vmem [shape: bf16[16,32], index: 0, kind: input, shape index: {}]   ;;  %s298_s1 = inlined_call_operand.vmem [shape: bf16[128,32], index: 1, kind: input, shape index: {}]   ;;  %s299_s2 = inlined_call_operand.hbm [shape: f32[16,128], index: 2, kind: output, shape index: {}]  }
   0x1   :  { %v207_v0 = vld [vmem:[%s298_s1 + $0x38] sm:$0xff]   ;;  %182 = vmatprep.subr.bf16.mxu0 %v238_v1  ;;  %v208_v3 = vld [vmem:[%s298_s1 + $0x30] sm:$0xff]   ;;  %198 = vmatprep.mubr.msk.bf16.mxu0 %vm239_vm1, %v238_v1 }
   0x2   :  { %v102_v2 = vsel %vm76_vm0, %v207_v0, 0  ;;  %v99_v4 = vsel %vm76_vm0, %v208_v3, 0 }
   0x3   :  { %183 = vmatpush3.bf16.xpose.msra.mxu0 %v102_v2 }
   0x4   :  { %184 = vmatprep.subr.bf16.mxu0 %v238_v1 }
   0x5   :  { %7 = vsyncpa [#allocation3], 0  ;;  %v209_v5 = vld [vmem:[%s298_s1 + $0x28] sm:$0xff]   ;;  %v210_v7 = vld [vmem:[%s298_s1 + $0x20] sm:$0xff]   ;;  %s240_s27 = smov [#allocation2]  }
   0x6   :  { %v96_v6 = vsel %vm76_vm0, %v209_v5, 0  ;;  %v93_v8 = vsel %vm76_vm0, %v210_v7, 0  ;;  %v211_v9 = vld [vmem:[%s298_s1 + $0x18] sm:$0xff]   ;;  %v212_v11 = vld [vmem:[%s298_s1 + $0x10] sm:$0xff]   ;;  %v213_v13 = vld [vmem:[%s298_s1 + $0x8] sm:$0xff]   ;;  %s152_s28 = sshll.u32 %s240_s27, 4  ;;  %s153_s28 = int_to_ptr.vmem [resolvable:$true] %s152_s28 }
   0x7   :  { %v90_v10 = vsel %vm76_vm0, %v211_v9, 0  ;;  %v87_v12 = vsel %vm76_vm0, %v212_v11, 0  ;;  %v84_v14 = vsel %vm76_vm0, %v213_v13, 0  ;;  %v214_v15 = vld [vmem:[%s298_s1] sm:$0xff]   ;;  %s216_s29 = scalar_lea.vmem %s153_s28, 256  ;;  %p221_p1 = scmp.lt.s32.totalorder %s153_s28, %s153_s28 }
   0x8   :  { %v81_v16 = vsel %vm76_vm0, %v214_v15, 0  ;;  %v215_v17 = vld [vmem:[%s297_s0] sm:$0xff]   ;;  %p217_p0 = scmp.ne.s32.totalorder %s153_s28, %s216_s29  ;;  %p222_p2 = scmp.lt.s32.totalorder %s216_s29, %s216_s29 }
   0xa   :  { %p223_p3 = por %p222_p2, %p221_p1 }
   0xb   :  { %185 = vmatpush3.bf16.xpose.msra.mxu0 %v99_v4 }
   0xc   :  { %186 = vmatprep.subr.bf16.mxu0 %v238_v1  ;;  %p224_p4 = pnand %p223_p3, %p217_p0 }
  0x13   :  { %187 = vmatpush3.bf16.xpose.msra.mxu0 %v96_v6 }
  0x14   :  { %188 = vmatprep.subr.bf16.mxu0 %v238_v1 }
  0x1b   :  { %189 = vmatpush3.bf16.xpose.msra.mxu0 %v93_v8 }
  0x1c   :  { %190 = vmatprep.subr.bf16.mxu0 %v238_v1 }
  0x23   :  { %191 = vmatpush3.bf16.xpose.msra.mxu0 %v90_v10 }
  0x24   :  { %192 = vmatprep.subr.bf16.mxu0 %v238_v1 }
  0x2b   :  { %193 = vmatpush3.bf16.xpose.msra.mxu0 %v87_v12 }
  0x2c   :  { %194 = vmatprep.subr.bf16.mxu0 %v238_v1 }
  0x33   :  { %195 = vmatpush3.bf16.xpose.msra.mxu0 %v84_v14 }
  0x34   :  { %196 = vmatprep.subr.bf16.mxu0 %v238_v1 }
  0x3b   :  { %197 = vmatpush3.bf16.xpose.msra.mxu0 %v81_v16 }
  0x42   :  { %199 = vmatmul.mubr.msk.bf16.vlgmr.msra.gmra.mxu0 %vm76_vm0, %v215_v17 }
 0x102   :  { %v138_v18 = vpop.f32.mrf.mxu0 }
 0x103   :  { %145 = vst [vmem:[#allocation2] sm:$0xff] %v138_v18 }
 0x104   :  { %v200_v19 = vpop.f32.mrf.mxu0 }
 0x106   :  { %v141_v20 = vpop.f32.mrf.mxu0 }
 0x107   :  { %146 = vst [vmem:[#allocation2 + $0x8] sm:$0xff] %v141_v20 }
 0x108   :  { %v201_v21 = vpop.f32.mrf.mxu0 }
 0x109   :  { %227 = shalt.err (!%p224_p4)
}
 0x10a   :  { %s241_s1 = smov 128   ;;  %s242_s0 = smov 8  }
 0x10b   :  { %158 = dma.vmem_to_hbm [thread:$0]  %s153_s28, 256, %s299_s2, [#allocation3], %s241_s1, %s241_s1, %s242_s0  }
 0x10c   :  { %236 = dma.done.wait [#allocation3], 256  }
 0x10d   :  { %237 = vsyncadd [#allocation3], 4294967040 }
 0x10e   :  { %162 = vsyncpa [#allocation3], 1 }

</bundles_post_ra>
